<compile_context>
chip_gen: v6e
topology: v6e:2x2x1
jax: 0.10.0
libtpu: 0.0.40
codegen_flags: <defaults>
</compile_context>

<pallas_src>
import jax
import jax.numpy as jnp
from jax.experimental import pallas as pl
from jax.experimental.pallas import tpu as pltpu


LANE = 128


def _round_up(a, m):
    return ((a + m - 1) // m) * m


def _sublane(dtype):
    # native sublane tile: 8 for f32, 16 for bf16, 32 for int8
    return max(8, 32 // jnp.dtype(dtype).itemsize)


def _vmem_budgets():
    """(tiled block budget, explicit scoped-vmem limit, fast-path cap) in bytes."""
    try:
        vmem = pltpu.get_tpu_info().vmem_capacity_bytes
    except Exception:
        vmem = 64 * 1024 * 1024                    # assume the smallest (v7x)
    if vmem >= 128 * 1024 * 1024:                  # v5e / v6e: 128 MiB physical
        block_budget = 24 * 1024 * 1024
        fast_cap = 16 * 1024 * 1024
    else:                                          # v7x: 64 MiB physical per core
        block_budget = 16 * 1024 * 1024
        fast_cap = 12 * 1024 * 1024
    vmem_limit = 32 * 1024 * 1024                  # safe scoped limit on all generations
    return block_budget, vmem_limit, fast_cap


def _spatial_tile(hw, rows_padded, itemsize, budget, nbuf, max_lanes=None):
    """Largest lane tile (multiple of 128, or full HW) fitting `nbuf` buffers in budget."""
    cap = max(LANE, budget // max(1, nbuf * rows_padded * itemsize))
    if max_lanes is not None:
        cap = min(cap, max(LANE, max_lanes))
    if hw <= cap:
        return hw                                  # full-extent block (always legal)
    return max(LANE, (cap // LANE) * LANE)


# ---------------- fast path: pool + channel MLP + apply fused in one kernel --

def _fused_kernel(x_ref, w1_ref, b1_ref, w2_ref, b2_ref, o_ref):
    xv = x_ref[...]
    pooled = jnp.max(xv, axis=1, keepdims=True).astype(jnp.float32)       # [BC, 1]
    # per-batch channel MLP as one block-diagonal matmul (BN folded into weights)
    h = jnp.dot(w1_ref[...], pooled, preferred_element_type=jnp.float32) + b1_ref[...]
    h = jnp.maximum(h, 0.0)
    y = jnp.dot(w2_ref[...], h, preferred_element_type=jnp.float32) + b2_ref[...]
    wgt = jax.nn.sigmoid(y) + 1.0                  # w*x + x == (w + 1) * x
    o_ref[...] = (wgt * xv.astype(jnp.float32)).astype(o_ref.dtype)


# ---------------- general path, pass 1: tiled global max over HW ------------

def _make_pool_kernel(hw, t_hw):
    need_mask = (hw % t_hw) != 0

    def kernel(x_ref, p_ref):
        t = pl.program_id(1)

        @pl.when(t == 0)
        def _():
            p_ref[...] = jnp.full(p_ref.shape, -jnp.inf, p_ref.dtype)

        xv = x_ref[...]
        if need_mask:
            # ragged last spatial tile: mask out-of-range lanes instead of padding x in HBM
            lane = jax.lax.broadcasted_iota(jnp.int32, xv.shape, 1)
            xv = jnp.where(lane < (hw - t * t_hw), xv, jnp.array(-jnp.inf, xv.dtype))
        tile_max = jnp.max(xv, axis=1, keepdims=True).astype(p_ref.dtype)
        p_ref[...] = jnp.maximum(p_ref[...], tile_max)

    return kernel


# ---------------- general path, pass 2: tiny per-batch channel MLP ----------

def _weight_kernel(p_ref, w1t_ref, b1_ref, w2t_ref, b2_ref, o_ref):
    # p_ref: [B, C] pooled maxima; output is (sigmoid(...) + 1) per (batch, channel)
    h = jnp.dot(p_ref[...], w1t_ref[...], preferred_element_type=jnp.float32) + b1_ref[...]
    h = jnp.maximum(h, 0.0)
    y = jnp.dot(h, w2t_ref[...], preferred_element_type=jnp.float32) + b2_ref[...]
    o_ref[...] = jax.nn.sigmoid(y) + 1.0


# ---------------- general path, pass 3: tiled broadcast apply ---------------

def _apply_kernel(w_ref, x_ref, o_ref):
    # w_ref: [R, 1] kept in f32 through the multiply; x/o: [R, T]
    o_ref[...] = (w_ref[...] * x_ref[...].astype(jnp.float32)).astype(o_ref.dtype)


def channel_attention(x, params, *, force_tiled=False, max_rows=512, max_lanes=None):
    """x: [B, C, H, W] (NCHW). Returns [B, C, H, W]."""
    B, C, H, W = x.shape
    HW = H * W
    BC = B * C
    w1, b1, s1, t1, w2, b2, s2, t2 = params

    # Fold eval-mode BatchNorm scale/shift into the 1x1-conv weights/biases.
    w1f = (s1 * w1).astype(jnp.float32)            # [C, C]
    b1f = (s1 * b1 + t1).astype(jnp.float32)       # [C, 1]
    w2f = (s2 * w2).astype(jnp.float32)
    b2f = (s2 * b2 + t2).astype(jnp.float32)

    x2 = x.reshape(BC, HW)                         # lane-dense [B*C, HW] view (free)
    itemsize = jnp.dtype(x.dtype).itemsize
    sub = _sublane(x.dtype)
    block_budget, vmem_limit, fast_cap = _vmem_budgets()

    # ----- fast path: whole x fits VMEM -> single fused kernel (2N HBM traffic) -----
    bc_pad = _round_up(BC, sub)
    hw_pad = _round_up(HW, LANE)
    fast_bytes = (2 * 2 * bc_pad * hw_pad * itemsize     # x in + out (double-buffered)
                  + 2 * 2 * bc_pad * bc_pad * 4)          # two block-diagonal weights
    if not force_tiled and BC <= 1024 and fast_bytes <= fast_cap:
        eye = jnp.eye(B, dtype=jnp.float32)
        w1_big = jnp.kron(eye, w1f)                # [BC, BC] block-diagonal
        w2_big = jnp.kron(eye, w2f)
        b1_big = jnp.tile(b1f, (B, 1))             # [BC, 1]
        b2_big = jnp.tile(b2f, (B, 1))
        out2 = pl.pallas_call(
            _fused_kernel,
            out_shape=jax.ShapeDtypeStruct((BC, HW), x.dtype),
            grid_spec=pltpu.PrefetchScalarGridSpec(
                num_scalar_prefetch=0,
                grid=(1,),
                in_specs=[pl.BlockSpec((BC, HW), lambda i: (0, 0)),
                          pl.BlockSpec((BC, BC), lambda i: (0, 0)),
                          pl.BlockSpec((BC, 1), lambda i: (0, 0)),
                          pl.BlockSpec((BC, BC), lambda i: (0, 0)),
                          pl.BlockSpec((BC, 1), lambda i: (0, 0))],
                out_specs=pl.BlockSpec((BC, HW), lambda i: (0, 0)),
            ),
            compiler_params=pltpu.CompilerParams(
                dimension_semantics=("arbitrary",),
                vmem_limit_bytes=vmem_limit),
        )(x2, w1_big, b1_big, w2_big, b2_big)
        return out2.reshape(B, C, H, W)

    # ----- general tiled path -----
    # Pass 1: global max over HW, grid = (row blocks "parallel", spatial tiles "arbitrary").
    if BC <= max_rows:
        R1 = BC                                    # full-extent row block
        if BC >= 2 * sub:
            # give v7x's 2 TensorCores at least 2 parallel row blocks
            R1 = _round_up((BC + 1) // 2, sub)
    else:
        R1 = max(sub, (max_rows // sub) * sub)
    r1_pad = _round_up(R1, sub)                    # real (sublane-padded) footprint
    T1 = _spatial_tile(HW, r1_pad, itemsize, block_budget, nbuf=2, max_lanes=max_lanes)
    grid1 = (pl.cdiv(BC, R1), pl.cdiv(HW, T1))

    pooled = pl.pallas_call(
        _make_pool_kernel(HW, T1),
        out_shape=jax.ShapeDtypeStruct((BC, 1), jnp.float32),
        grid_spec=pltpu.PrefetchScalarGridSpec(
            num_scalar_prefetch=0,
            grid=grid1,
            in_specs=[pl.BlockSpec((R1, T1), lambda r, t: (r, t))],
            out_specs=pl.BlockSpec((R1, 1), lambda r, t: (r, 0)),
        ),
        compiler_params=pltpu.CompilerParams(
            dimension_semantics=("parallel", "arbitrary"),
            vmem_limit_bytes=vmem_limit),
    )(x2)

    # Pass 2: tiny per-batch channel MLP on the [B, C] pooled layout.  Negligible
    # next to streaming a large x twice; the launch-sensitive small-x case is
    # handled entirely by the fused fast path above.
    wplus1_bc = pl.pallas_call(
        _weight_kernel,
        out_shape=jax.ShapeDtypeStruct((B, C), jnp.float32),
        grid_spec=pltpu.PrefetchScalarGridSpec(
            num_scalar_prefetch=0,
            grid=(1,),
            in_specs=[pl.BlockSpec((B, C), lambda i: (0, 0)),
                      pl.BlockSpec((C, C), lambda i: (0, 0)),
                      pl.BlockSpec((1, C), lambda i: (0, 0)),
                      pl.BlockSpec((C, C), lambda i: (0, 0)),
                      pl.BlockSpec((1, C), lambda i: (0, 0))],
            out_specs=pl.BlockSpec((B, C), lambda i: (0, 0)),
        ),
        compiler_params=pltpu.CompilerParams(
            dimension_semantics=("arbitrary",),
            vmem_limit_bytes=vmem_limit),
    )(pooled.reshape(B, C), w1f.T, b1f.T, w2f.T, b2f.T)
    wplus1 = wplus1_bc.reshape(BC, 1)              # stays f32 through the multiply

    # Pass 3: out = (w + 1) * x, grid fully "parallel"; ragged OOB writes dropped.
    if BC <= max_rows:
        R3 = BC
    else:
        R3 = max(sub, (max_rows // sub) * sub)
    r3_pad = _round_up(R3, sub)
    T3 = _spatial_tile(HW, r3_pad, itemsize, block_budget, nbuf=4, max_lanes=max_lanes)
    grid3 = (pl.cdiv(BC, R3), pl.cdiv(HW, T3))

    out2 = pl.pallas_call(
        _apply_kernel,
        out_shape=jax.ShapeDtypeStruct((BC, HW), x.dtype),
        grid_spec=pltpu.PrefetchScalarGridSpec(
            num_scalar_prefetch=0,
            grid=grid3,
            in_specs=[pl.BlockSpec((R3, 1), lambda r, t: (r, 0)),
                      pl.BlockSpec((R3, T3), lambda r, t: (r, t))],
            out_specs=pl.BlockSpec((R3, T3), lambda r, t: (r, t)),
        ),
        compiler_params=pltpu.CompilerParams(
            dimension_semantics=("parallel", "parallel"),
            vmem_limit_bytes=vmem_limit),
    )(wplus1, x2)

    return out2.reshape(B, C, H, W)


def init_params(key, C):
    """Deterministic synthetic init matching the module's parameter shapes."""
    k1, k2, k3, k4 = jax.random.split(key, 4)
    bound = 1.0 / (C ** 0.5)     # PyTorch Conv2d default-style uniform bound (fan_in = C)
    w1 = jax.random.uniform(k1, (C, C), jnp.float32, -bound, bound)
    b1 = jax.random.uniform(k2, (C, 1), jnp.float32, -bound, bound)
    w2 = jax.random.uniform(k3, (C, C), jnp.float32, -bound, bound)
    b2 = jax.random.uniform(k4, (C, 1), jnp.float32, -bound, bound)
    # BatchNorm2d defaults (eval): gamma=1, beta=0, running_mean=0, running_var=1, eps=1e-5
    eps = 1e-5
    gamma = jnp.ones((C, 1), jnp.float32)
    beta = jnp.zeros((C, 1), jnp.float32)
    mean = jnp.zeros((C, 1), jnp.float32)
    var = jnp.ones((C, 1), jnp.float32)
    s = gamma / jnp.sqrt(var + eps)
    t = beta - mean * s
    return w1, b1, s, t, w2, b2, s, t


def channel_attention_ref(x, params):
    """Pure-JAX reference for correctness check."""
    w1, b1, s1, t1, w2, b2, s2, t2 = params
    p = jnp.max(x, axis=(2, 3))                           # [B, C]
    y1 = p @ w1.T + b1[:, 0]
    y1 = y1 * s1[:, 0] + t1[:, 0]
    h1 = jnp.maximum(y1, 0.0)
    y2 = h1 @ w2.T + b2[:, 0]
    y2 = y2 * s2[:, 0] + t2[:, 0]
    w = jax.nn.sigmoid(y2)[:, :, None, None]              # [B, C, 1, 1]
    return w * x + x


if __name__ == "__main__":
    key = jax.random.PRNGKey(0)
    kx, kp, kx2, kx3 = jax.random.split(key, 4)

    # 1) Fused fast path (x fits VMEM), lane-aligned spatial (HW = 256).
    B, C, H, W = 2, 4, 16, 16
    x = jax.random.normal(kx, (B, C, H, W), jnp.float32)
    params = init_params(kp, C)
    ref = channel_attention_ref(x, params)
    out = jax.block_until_ready(channel_attention(x, params))
    assert out.shape == (B, C, H, W)
    assert jnp.allclose(out, ref, atol=1e-5, rtol=1e-5), "fast path mismatch"

    # 2) Fast path, non-128-aligned spatial (HW = 100), no HBM padding anywhere.
    x2 = jax.random.normal(kx2, (B, C, 10, 10), jnp.float32)
    out2 = jax.block_until_ready(channel_attention(x2, params))
    assert jnp.allclose(out2, channel_attention_ref(x2, params),
                        atol=1e-5, rtol=1e-5), "fast path (unaligned) mismatch"

    # 3) General tiled path on the aligned shape.
    out3 = jax.block_until_ready(channel_attention(x, params, force_tiled=True))
    assert jnp.allclose(out3, ref, atol=1e-5, rtol=1e-5), "tiled path mismatch"

    # 4) General tiled path with ragged row blocks and masked ragged spatial tiles.
    B4, C4, H4, W4 = 3, 5, 13, 11          # B*C = 15, HW = 143 (nothing aligned)
    params4 = init_params(kp, C4)
    x4 = jax.random.normal(kx3, (B4, C4, H4, W4), jnp.float32)
    out4 = jax.block_until_ready(
        channel_attention(x4, params4, force_tiled=True, max_rows=8, max_lanes=128))
    assert jnp.allclose(out4, channel_attention_ref(x4, params4),
                        atol=1e-5, rtol=1e-5), "tiled path (ragged) mismatch"

    print("KERNEL_OK")
</pallas_src>

<mosaic_0001>
module attributes {stable_mosaic.version = 11 : i64} {
  func.func @_fused_kernel(%arg0: i32, %arg1: memref<8x256xf32, #tpu.memory_space<vmem>>, %arg2: memref<8x8xf32, #tpu.memory_space<vmem>>, %arg3: memref<8x1xf32, #tpu.memory_space<vmem>>, %arg4: memref<8x8xf32, #tpu.memory_space<vmem>>, %arg5: memref<8x1xf32, #tpu.memory_space<vmem>>, %arg6: memref<8x256xf32, #tpu.memory_space<vmem>>) attributes {dimension_semantics = [#tpu.dimension_semantics<arbitrary>], iteration_bounds = array<i64: 1>, scalar_prefetch = 0 : i64, scratch_operands = 0 : i64, tpu.core_type = #tpu.core_type<tc>, window_params = [{pipeline_mode = #tpu.pipeline_mode<synchronous>, transform_indices = @transform_0, window_bounds = array<i64: 8, 256>}, {pipeline_mode = #tpu.pipeline_mode<synchronous>, transform_indices = @transform_1, window_bounds = array<i64: 8, 8>}, {pipeline_mode = #tpu.pipeline_mode<synchronous>, transform_indices = @transform_2, window_bounds = array<i64: 8, 1>}, {pipeline_mode = #tpu.pipeline_mode<synchronous>, transform_indices = @transform_3, window_bounds = array<i64: 8, 8>}, {pipeline_mode = #tpu.pipeline_mode<synchronous>, transform_indices = @transform_4, window_bounds = array<i64: 8, 1>}, {pipeline_mode = #tpu.pipeline_mode<synchronous>, transform_indices = @transform_5, window_bounds = array<i64: 8, 256>}]} {
    %c0 = arith.constant 0 : index
    %c0_0 = arith.constant 0 : index
    %0 = vector.load %arg1[%c0, %c0_0] : memref<8x256xf32, #tpu.memory_space<vmem>>, vector<8x256xf32>
    %cst = arith.constant dense<0xFF800000> : vector<8xf32>
    %1 = vector.multi_reduction <maximumf>, %0, %cst [1] : vector<8x256xf32> to vector<8xf32>
    %2 = vector.shape_cast %1 : vector<8xf32> to vector<8x1xf32>
    %c0_1 = arith.constant 0 : index
    %c0_2 = arith.constant 0 : index
    %3 = vector.load %arg2[%c0_1, %c0_2] : memref<8x8xf32, #tpu.memory_space<vmem>>, vector<8x8xf32>
    %cst_3 = arith.constant dense<0.000000e+00> : vector<8x1xf32>
    %4 = tpu.matmul %3, %2, %cst_3 {dimension_numbers = #tpu.dot_dimension_numbers<[1], [0], [0], [1], [0, 0, 1, 1], [], []>} : vector<8x8xf32>, vector<8x1xf32>, vector<8x1xf32> -> vector<8x1xf32>
    %c0_4 = arith.constant 0 : index
    %c0_5 = arith.constant 0 : index
    %5 = vector.load %arg3[%c0_4, %c0_5] : memref<8x1xf32, #tpu.memory_space<vmem>>, vector<8x1xf32>
    %6 = arith.addf %4, %5 : vector<8x1xf32>
    %cst_6 = arith.constant 0.000000e+00 : f32
    %7 = vector.broadcast %cst_6 : f32 to vector<8x1xf32>
    %8 = arith.maximumf %6, %7 : vector<8x1xf32>
    %c0_7 = arith.constant 0 : index
    %c0_8 = arith.constant 0 : index
    %9 = vector.load %arg4[%c0_7, %c0_8] : memref<8x8xf32, #tpu.memory_space<vmem>>, vector<8x8xf32>
    %cst_9 = arith.constant dense<0.000000e+00> : vector<8x1xf32>
    %10 = tpu.matmul %9, %8, %cst_9 {dimension_numbers = #tpu.dot_dimension_numbers<[1], [0], [0], [1], [0, 0, 1, 1], [], []>} : vector<8x8xf32>, vector<8x1xf32>, vector<8x1xf32> -> vector<8x1xf32>
    %c0_10 = arith.constant 0 : index
    %c0_11 = arith.constant 0 : index
    %11 = vector.load %arg5[%c0_10, %c0_11] : memref<8x1xf32, #tpu.memory_space<vmem>>, vector<8x1xf32>
    %12 = arith.addf %10, %11 : vector<8x1xf32>
    %13 = arith.negf %12 : vector<8x1xf32>
    %14 = math.exp %13 : vector<8x1xf32>
    %cst_12 = arith.constant 1.000000e+00 : f32
    %15 = vector.broadcast %cst_12 : f32 to vector<8x1xf32>
    %16 = arith.addf %15, %14 : vector<8x1xf32>
    %17 = arith.divf %15, %16 : vector<8x1xf32>
    %cst_13 = arith.constant 1.000000e+00 : f32
    %18 = vector.broadcast %cst_13 : f32 to vector<8x1xf32>
    %19 = arith.addf %17, %18 : vector<8x1xf32>
    %20 = vector.broadcast %19 : vector<8x1xf32> to vector<8x256xf32>
    %21 = arith.mulf %20, %0 : vector<8x256xf32>
    %c0_14 = arith.constant 0 : index
    %c0_15 = arith.constant 0 : index
    %22 = vector.load %arg6[%c0_14, %c0_15] : memref<8x256xf32, #tpu.memory_space<vmem>>, vector<8x256xf32>
    tpu.vector_store %arg6[%c0_14, %c0_15], %21 {strides = array<i32>} : memref<8x256xf32, #tpu.memory_space<vmem>>, vector<8x256xf32>,
    return
  }
  func.func @transform_0(%arg0: i32) -> (i32, i32) {
    %c0_i32 = arith.constant 0 : i32
    %c0_i32_0 = arith.constant 0 : i32
    %c0_i32_1 = arith.constant 0 : i32
    return %c0_i32, %c0_i32_0 : i32, i32
  }
  func.func @transform_1(%arg0: i32) -> (i32, i32) {
    %c0_i32 = arith.constant 0 : i32
    %c0_i32_0 = arith.constant 0 : i32
    %c0_i32_1 = arith.constant 0 : i32
    return %c0_i32, %c0_i32_0 : i32, i32
  }
  func.func @transform_2(%arg0: i32) -> (i32, i32) {
    %c0_i32 = arith.constant 0 : i32
    %c0_i32_0 = arith.constant 0 : i32
    %c0_i32_1 = arith.constant 0 : i32
    return %c0_i32, %c0_i32_0 : i32, i32
  }
  func.func @transform_3(%arg0: i32) -> (i32, i32) {
    %c0_i32 = arith.constant 0 : i32
    %c0_i32_0 = arith.constant 0 : i32
    %c0_i32_1 = arith.constant 0 : i32
    return %c0_i32, %c0_i32_0 : i32, i32
  }
  func.func @transform_4(%arg0: i32) -> (i32, i32) {
    %c0_i32 = arith.constant 0 : i32
    %c0_i32_0 = arith.constant 0 : i32
    %c0_i32_1 = arith.constant 0 : i32
    return %c0_i32, %c0_i32_0 : i32, i32
  }
  func.func @transform_5(%arg0: i32) -> (i32, i32) {
    %c0_i32 = arith.constant 0 : i32
    %c0_i32_0 = arith.constant 0 : i32
    %c0_i32_1 = arith.constant 0 : i32
    return %c0_i32, %c0_i32_0 : i32, i32
  }
}

</mosaic_0001>

<bundles_post_ra>
// kernel: tpu_custom_call.1
= control target key start
LH: loop header
LB: loop body
LE: loop exit
PB: predicated region body
PF: predicated region fallthrough
CT: control target
= control target key end

     0   :  { %10 = vsyncpa [#allocation3], 0  ;;  %s385_s0 = inlined_call_operand.vmem [shape: f32[8,256], index: 0, kind: input, shape index: {}]   ;;  %s386_s1 = inlined_call_operand.hbm [shape: f32[8,8], index: 1, kind: input, shape index: {}]   ;;  %s387_s2 = inlined_call_operand.vmem [shape: f32[8,1], index: 2, kind: input, shape index: {}]   ;;  %s388_s3 = inlined_call_operand.hbm [shape: f32[8,8], index: 3, kind: input, shape index: {}]   ;;  %s389_s4 = inlined_call_operand.vmem [shape: f32[8,1], index: 4, kind: input, shape index: {}]   ;;  %s390_s5 = inlined_call_operand.hbm [shape: f32[8,256], index: 5, kind: output, shape index: {}]  }
   0x1   :  { %11 = vsyncpa [#allocation6], 0 }
   0x2   :  { %12 = vsyncpa [#allocation4], 0  ;;  %s328_s18 = smov [#allocation2]   ;;  %s329_s20 = smov [#allocation5]  }
   0x3   :  { %s21_s19 = sshll.u32 %s328_s18, 4  ;;  %s33_s21 = sshll.u32 %s329_s20, 4  ;;  %s22_s19 = int_to_ptr.vmem [resolvable:$true] %s21_s19  ;;  %s34_s21 = int_to_ptr.vmem [resolvable:$true] %s33_s21 }
   0x4   :  { %s270_s22 = scalar_lea.vmem %s22_s19, 128  ;;  %p275_p1 = scmp.lt.s32.totalorder %s22_s19, %s22_s19 }
   0x5   :  { %p271_p0 = scmp.ne.s32.totalorder %s22_s19, %s270_s22  ;;  %p276_p2 = scmp.lt.s32.totalorder %s270_s22, %s270_s22 }
   0x7   :  { %p277_p3 = por %p276_p2, %p275_p1 }
   0x9   :  { %p278_p4 = pnand %p277_p3, %p271_p0 }
   0xb   :  { %281 = shalt.err (!%p278_p4)
}
   0xc   :  { %24 = dma.hbm_to_vmem [thread:$0]  %s386_s1, 128, %s22_s19, [#allocation3]  }
   0xd   :  { %s290_s25 = scalar_lea.vmem %s34_s21, 128  ;;  %p295_p6 = scmp.lt.s32.totalorder %s34_s21, %s34_s21 }
   0xe   :  { %p291_p5 = scmp.ne.s32.totalorder %s34_s21, %s290_s25  ;;  %p296_p7 = scmp.lt.s32.totalorder %s290_s25, %s290_s25 }
  0x10   :  { %p297_p8 = por %p296_p7, %p295_p6 }
  0x12   :  { %p298_p9 = pnand %p297_p8, %p291_p5 }
  0x14   :  { %301 = shalt.err (!%p298_p9)
}
  0x15   :  { %36 = dma.hbm_to_vmem [thread:$0]  %s388_s3, 128, %s34_s21, [#allocation6]  }
  0x16   :  { %322 = dma.done.wait [#allocation3], 128  }
  0x17   :  { %323 = vsyncadd [#allocation3], 4294967168 }
  0x18   :  { %324 = dma.done.wait [#allocation6], 128  }
  0x19   :  { %325 = vsyncadd [#allocation6], 4294967168  ;;  %v330_v0 = vmov 0.0   ;;  %v45_v1 = vld [vmem:[%s385_s0] sm:$0xff]  ;;  %v46_v2 = vld [vmem:[%s385_s0 + $0x8] sm:$0xff]  ;;  %vm331_vm0 = vmmov 0  }
  0x1a   :  { %241 = vmatprep.subr.mxu0 %v330_v0  ;;  %246 = vmatprep.subr.mxu1 %v330_v0  ;;  %v47_v3 = vmax.f32 %v45_v1, %v46_v2  ;;  %v50_v4 = vld [vmem:[#allocation2] sm:$0xff]  ;;  %vm52_vm1 = vcmask 64512   ;;  %v127_v11 = vld [vmem:[#allocation5] sm:$0xff]  ;;  %v332_v12 = vmov 0  }
  0x1b   :  { %243 = vmatprep.mubr.msk.f32.mxu0 %vm331_vm0, %v330_v0  ;;  %248 = vmatprep.mubr.msk.f32.mxu1 %vm331_vm0, %v330_v0  ;;  %v51_v6 = vld [vmem:[%s387_s2] sm:$0xff]  ;;  %s333_s2 = smov [#allocation7]  }
  0x1c   :  { %48 = vmax.xlane.f32.xlu0 %v47_v3  ;;  %v128_v13 = vld [vmem:[%s389_s4] sm:$0xff]  ;;  %s224_s8 = sshll.u32 %s333_s2, 4  ;;  %s225_s8 = int_to_ptr.vmem [resolvable:$true] %s224_s8 }
  0x1d   :  { %257 = vset.pattern.permute.xlu0 %v332_v12  ;;  %s302_s4 = scalar_lea.vmem %s225_s8, 256  ;;  %p307_p11 = scmp.lt.s32.totalorder %s225_s8, %s225_s8 }
  0x1e   :  { %p303_p10 = scmp.ne.s32.totalorder %s225_s8, %s302_s4  ;;  %p308_p12 = scmp.lt.s32.totalorder %s302_s4, %s302_s4 }
  0x20   :  { %p309_p13 = por %p308_p12, %p307_p11 }
  0x22   :  { %p310_p0 = pnand %p309_p13, %p303_p10 }
  0xa5   :  { %v49_v5 = vpop.xlane.xlu0 %48 }
  0xa6   :  { %242 = vmatpush3.msra.mxu0 %v49_v5 }
  0xa7   :  { %244 = vmatmul.mubr.msk.f32.vlgmr.msra.gmra.mxu0 %vm52_vm1, %v50_v4 }
 0x167   :  { %v122_v7 = vpop.f32.mrf.mxu0 }
 0x168   :  { %v123_v8 = vadd.f32 %v122_v7, %v51_v6 }
 0x169   :  { %v245_v9 = vpop.f32.mrf.mxu0 }
 0x16a   :  { %v126_v10 = vmax.f32 %v123_v8, 0.0 }
 0x16c   :  { %247 = vmatpush3.msra.mxu1 %v126_v10 }
 0x16d   :  { %249 = vmatmul.mubr.msk.f32.vlgmr.msra.gmra.mxu1 %vm52_vm1, %v127_v11 }
 0x22d   :  { %v198_v14 = vpop.f32.mrf.mxu1 }
 0x22e   :  { %v199_v15 = vadd.f32 %v198_v14, %v128_v13 }
 0x22f   :  { %v250_v16 = vpop.f32.mrf.mxu1 }
 0x230   :  { %v236_v17 = vmul.f32 -1.442695, %v199_v15 }
 0x232   :  { %258 = vpow2.f32 %v236_v17 }
 0x23f   :  { %v259_v18 = vpop.eup %258 }
 0x240   :  { %v205_v19 = vadd.f32 1.0, %v259_v18 }
 0x242   :  { %260 = vrcp.f32 %v205_v19 }
 0x24f   :  { %v261_v20 = vpop.eup %260 }
 0x250   :  { %v208_v21 = vadd.f32 1.0, %v261_v20 }
 0x252   :  { %211 = vperm.xlu0 %257, %v208_v21  }
 0x2cd   :  { %v212_v22 = vpop.permute.xlu0 %211 }
 0x2ce   :  { %v214_v23 = vmul.f32 %v212_v22, %v45_v1  ;;  %v215_v24 = vmul.f32 %v212_v22, %v46_v2 }
 0x2d0   :  { %216 = vst [vmem:[#allocation7] sm:$0xff] %v214_v23  ;;  %217 = vst [vmem:[#allocation7 + $0x8] sm:$0xff] %v215_v24 }
 0x2d1   :  { %313 = shalt.err (!%p310_p0)
}
 0x2d2   :  { %227 = dma.vmem_to_hbm [thread:$0]  %s225_s8, 256, %s390_s5, [#allocation4]  }
 0x2d3   :  { %326 = dma.done.wait [#allocation4], 256  }
 0x2d4   :  { %327 = vsyncadd [#allocation4], 4294967040 }
 0x2d5   :  { %231 = vsyncpa [#allocation3], 1 }
 0x2d6   :  { %232 = vsyncpa [#allocation6], 1 }
 0x2d7   :  { %233 = vsyncpa [#allocation4], 1 }

</bundles_post_ra>
